<compile_context>
chip_gen: v7x
topology: tpu7x:2x2x1
jax: 0.10.0
libtpu: 0.0.40
codegen_flags: <defaults>
</compile_context>

<pallas_src>
import jax
import jax.numpy as jnp
from jax.experimental import pallas as pl
from jax.experimental.pallas import tpu as pltpu


def _round_up(x, m):
    return ((x + m - 1) // m) * m


def _default_block_m():
    # v5-class: smaller default scoped VMEM -> 2048-row tiles; v6e/v7x: 4096.
    try:
        kind = jax.devices()[0].device_kind.lower()
    except Exception:
        return 2048
    return 2048 if "v5" in kind else 4096


def _resident(shape):
    """Weights/biases: constant block index -> fetched once, stay VMEM-resident."""
    zeros = (0,) * len(shape)
    return pl.BlockSpec(shape, lambda i, _z=zeros: _z)


def seq_pretrained_kernel(
    x_ref,                         # (TM, 2*hw) f32 — both channels, natural layout
    w1_ref, b1_ref,                # (2*hw, 2*hid), (1, 2*hid)   block-diag aux layer 1
    w2_ref, b2_ref,                # (2*hid, 2*ncls), (1, 2*ncls) block-diag aux layer 2
    wd_ref, c1_ref,                # (2*ncls, hid), (1, hid)      fused argmax + target layer 1
    v2_ref, c2_ref,                # (hid, n_out), (1, n_out)     target layer 2
    out_ref,                       # (TM, n_out) f32
):
    x = x_ref[...]

    # Auxiliary MLP for both channels in one matmul stream (block-diag weights).
    h = jnp.dot(x, w1_ref[...], preferred_element_type=jnp.float32) + b1_ref[...]
    h = jnp.maximum(h, 0.0)
    logits = jnp.dot(h, w2_ref[...], preferred_element_type=jnp.float32) + b2_ref[...]

    # Per-channel lane max: lanes [0, ncls) = channel 0, [ncls, 2*ncls) = channel 1.
    n2 = logits.shape[1]
    ncls = n2 // 2
    col = jax.lax.broadcasted_iota(jnp.int32, logits.shape, 1)
    is_ch0 = col < ncls
    neg_inf = jnp.float32(-jnp.inf)
    max0 = jnp.max(jnp.where(is_ch0, logits, neg_inf), axis=1, keepdims=True)
    max1 = jnp.max(jnp.where(is_ch0, neg_inf, logits), axis=1, keepdims=True)
    maxb = jnp.where(is_ch0, max0, max1)                 # (TM, 2*ncls)

    # Exact-f32 argmax mask.  The MXU matmul below resolves the argmax index AND
    # applies the target head's first layer:  mask @ W_digit = d1*v1[0] + d2*v1[1].
    # (On an exact f32 tie within a channel this sums the tied indices instead of
    #  taking the first like torch.argmax; probability ~0 for float activations.)
    mask = (logits == maxb).astype(jnp.float32)
    ht = jnp.dot(mask, wd_ref[...], preferred_element_type=jnp.float32) + c1_ref[...]
    ht = jnp.maximum(ht, 0.0)

    out_ref[...] = (
        jnp.dot(ht, v2_ref[...], preferred_element_type=jnp.float32) + c2_ref[...]
    )


def _prepare_fused_params(params):
    """Block-diagonal / fused weight layout (tiny, ~0.2 MiB; can be precomputed once)."""
    w1, b1 = params["w1"], params["b1"]
    w2, b2 = params["w2"], params["b2"]
    v1, c1 = params["v1"], params["c1"]
    v2, c2 = params["v2"], params["c2"]
    z1 = jnp.zeros_like(w1)
    z2 = jnp.zeros_like(w2)
    w1_blk = jnp.concatenate(
        [jnp.concatenate([w1, z1], axis=1), jnp.concatenate([z1, w1], axis=1)], axis=0)
    b1_blk = jnp.concatenate([b1, b1], axis=1)
    w2_blk = jnp.concatenate(
        [jnp.concatenate([w2, z2], axis=1), jnp.concatenate([z2, w2], axis=1)], axis=0)
    b2_blk = jnp.concatenate([b2, b2], axis=1)
    ncls = w2.shape[1]
    cls = jnp.arange(ncls, dtype=jnp.float32)[:, None]                        # (ncls, 1)
    w_digit = jnp.concatenate([cls * v1[0:1, :], cls * v1[1:2, :]], axis=0)   # (2*ncls, hid)
    return w1_blk, b1_blk, w2_blk, b2_blk, w_digit, c1, v2, c2


def sequence_pretrained_forward(x, params, *, block_m=None,
                                vmem_limit_bytes=48 * 1024 * 1024):
    """x: (B, 2, H, W) float32 (NCHW).  Returns (B, n_out) target logits."""
    B, C, H, W = x.shape
    assert C == 2
    hw = H * W
    hid = params["w1"].shape[1]
    ncls = params["w2"].shape[1]
    n_out = params["v2"].shape[1]

    # Natural layout, zero-copy: (B, 2, H, W) -> (B, 2*H*W) is metadata-only.
    x_flat = x.reshape(B, 2 * hw)

    w1_blk, b1_blk, w2_blk, b2_blk, w_digit, c1, v2, c2 = _prepare_fused_params(params)

    if block_m is None:
        block_m = _default_block_m()
    block_m = max(8, _round_up(block_m, 8))

    if B <= block_m:
        # Give each v7x TensorCore a tile when the batch is big enough to matter.
        tm = _round_up(pl.cdiv(B, 2), 8) if B > 256 else B
    else:
        tm = block_m
    grid = (pl.cdiv(B, tm),)   # ragged last tile: OOB reads are harmless, writes masked

    weight_bytes = 4 * int(w1_blk.size + b1_blk.size + w2_blk.size + b2_blk.size
                           + w_digit.size + c1.size + v2.size + c2.size)
    cost = pl.CostEstimate(
        flops=int(2 * B * (2 * hw * 2 * hid + 2 * hid * 2 * ncls
                           + 2 * ncls * hid + hid * n_out)),
        transcendentals=0,
        bytes_accessed=int(4 * B * 2 * hw + weight_bytes + 4 * B * n_out),
    )

    return pl.pallas_call(
        seq_pretrained_kernel,
        out_shape=jax.ShapeDtypeStruct((B, n_out), jnp.float32),
        grid_spec=pltpu.PrefetchScalarGridSpec(
            num_scalar_prefetch=0,
            grid=grid,
            in_specs=[
                pl.BlockSpec((tm, 2 * hw), lambda i: (i, 0)),   # pipelined activation tiles
                _resident((2 * hw, 2 * hid)), _resident((1, 2 * hid)),    # w1_blk, b1_blk
                _resident((2 * hid, 2 * ncls)), _resident((1, 2 * ncls)), # w2_blk, b2_blk
                _resident((2 * ncls, hid)), _resident((1, hid)),          # w_digit, c1
                _resident((hid, n_out)), _resident((1, n_out)),           # v2, c2
            ],
            out_specs=pl.BlockSpec((tm, n_out), lambda i: (i, 0)),
        ),
        compiler_params=pltpu.CompilerParams(
            dimension_semantics=("parallel",),      # shard batch tiles across TCs (v7x)
            vmem_limit_bytes=vmem_limit_bytes,      # explicit budget for the big tiles
        ),
        cost_estimate=cost,
    )(x_flat, w1_blk, b1_blk, w2_blk, b2_blk, w_digit, c1, v2, c2)


# ---------------------------------------------------------------------------
# Pure-JAX f32 reference with the exact PyTorch forward semantics + test utils
# ---------------------------------------------------------------------------

def _aux_ref(xc, params):
    h = jnp.maximum(jnp.dot(xc, params["w1"]) + params["b1"], 0.0)
    return jnp.dot(h, params["w2"]) + params["b2"]


def sequence_pretrained_reference(x, params):
    B = x.shape[0]
    xb = x.reshape(B, 2, x.shape[2] * x.shape[3])
    d1 = jnp.argmax(_aux_ref(xb[:, 0], params), axis=1).astype(jnp.float32)[:, None]
    d2 = jnp.argmax(_aux_ref(xb[:, 1], params), axis=1).astype(jnp.float32)[:, None]
    d = jnp.concatenate([d1, d2], axis=1)
    h = jnp.maximum(jnp.dot(d, params["v1"]) + params["c1"], 0.0)
    return jnp.dot(h, params["v2"]) + params["c2"]


def _check_against_reference(out, x, params, tol=1e-3, gap_tol=1e-2):
    """Row-wise check.  Rows whose auxiliary argmax is numerically ambiguous
    (top-2 logit gap below matmul rounding noise) may legitimately pick a
    different discrete digit between accumulation orders and are exempted."""
    ref = sequence_pretrained_reference(x, params)
    row_ok = jnp.all(jnp.abs(out - ref) <= tol * (1.0 + jnp.abs(ref)), axis=1)
    if bool(jnp.all(row_ok)):
        return
    B = x.shape[0]
    xb = x.reshape(B, 2, x.shape[2] * x.shape[3])

    def top2_gap(xc):
        s = jnp.sort(_aux_ref(xc, params), axis=1)
        return s[:, -1] - s[:, -2]

    ambiguous = (top2_gap(xb[:, 0]) < gap_tol) | (top2_gap(xb[:, 1]) < gap_tol)
    assert bool(jnp.all(row_ok | ambiguous)), "kernel mismatch on non-ambiguous rows"


def make_params(key, hw, hidden=32, n_classes=10, n_out=2):
    ks = jax.random.split(key, 8)
    s = 0.1
    return {
        # auxiliary: (H*W) -> hidden -> 10
        "w1": s * jax.random.normal(ks[0], (hw, hidden), jnp.float32),
        "b1": s * jax.random.normal(ks[1], (1, hidden), jnp.float32),
        "w2": s * jax.random.normal(ks[2], (hidden, n_classes), jnp.float32),
        "b2": s * jax.random.normal(ks[3], (1, n_classes), jnp.float32),
        # target: 2 -> hidden -> n_out
        "v1": s * jax.random.normal(ks[4], (2, hidden), jnp.float32),
        "c1": s * jax.random.normal(ks[5], (1, hidden), jnp.float32),
        "v2": s * jax.random.normal(ks[6], (hidden, n_out), jnp.float32),
        "c2": s * jax.random.normal(ks[7], (1, n_out), jnp.float32),
    }


if __name__ == "__main__":
    key = jax.random.PRNGKey(0)
    kx, kp, kx2 = jax.random.split(key, 3)

    H, W = 14, 14                       # MNIST-pair style input (B, 2, 14, 14)
    params = make_params(kp, H * W, hidden=32)

    # Small single-tile run.
    B = 2
    x = jax.random.normal(kx, (B, 2, H, W), jnp.float32)
    out = jax.block_until_ready(sequence_pretrained_forward(x, params))
    assert out.shape == (B, 2) and out.dtype == jnp.float32
    _check_against_reference(out, x, params)

    # Multi-tile run with a ragged last tile (grid = 3, valid rows 256..299 in
    # the last tile) to exercise the pipelined path and boundary masking.
    B2 = 300
    x2 = jax.random.normal(kx2, (B2, 2, H, W), jnp.float32)
    out2 = jax.block_until_ready(sequence_pretrained_forward(x2, params, block_m=128))
    assert out2.shape == (B2, 2)
    _check_against_reference(out2, x2, params)

    print("KERNEL_OK")
</pallas_src>

<mosaic_0001>
module attributes {stable_mosaic.version = 11 : i64} {
  func.func @seq_pretrained_kernel(%arg0: i32, %arg1: memref<2x392xf32, #tpu.memory_space<vmem>>, %arg2: memref<392x64xf32, #tpu.memory_space<vmem>>, %arg3: memref<1x64xf32, #tpu.memory_space<vmem>>, %arg4: memref<64x20xf32, #tpu.memory_space<vmem>>, %arg5: memref<1x20xf32, #tpu.memory_space<vmem>>, %arg6: memref<20x32xf32, #tpu.memory_space<vmem>>, %arg7: memref<1x32xf32, #tpu.memory_space<vmem>>, %arg8: memref<32x2xf32, #tpu.memory_space<vmem>>, %arg9: memref<1x2xf32, #tpu.memory_space<vmem>>, %arg10: memref<2x2xf32, #tpu.memory_space<vmem>>) attributes {dimension_semantics = [#tpu.dimension_semantics<parallel>], iteration_bounds = array<i64: 1>, scalar_prefetch = 0 : i64, scratch_operands = 0 : i64, tpu.core_type = #tpu.core_type<tc>, window_params = [{transform_indices = @transform_0, window_bounds = array<i64: 2, 392>}, {pipeline_mode = #tpu.pipeline_mode<synchronous>, transform_indices = @transform_1, window_bounds = array<i64: 392, 64>}, {pipeline_mode = #tpu.pipeline_mode<synchronous>, transform_indices = @transform_2, window_bounds = array<i64: 1, 64>}, {pipeline_mode = #tpu.pipeline_mode<synchronous>, transform_indices = @transform_3, window_bounds = array<i64: 64, 20>}, {pipeline_mode = #tpu.pipeline_mode<synchronous>, transform_indices = @transform_4, window_bounds = array<i64: 1, 20>}, {pipeline_mode = #tpu.pipeline_mode<synchronous>, transform_indices = @transform_5, window_bounds = array<i64: 20, 32>}, {pipeline_mode = #tpu.pipeline_mode<synchronous>, transform_indices = @transform_6, window_bounds = array<i64: 1, 32>}, {pipeline_mode = #tpu.pipeline_mode<synchronous>, transform_indices = @transform_7, window_bounds = array<i64: 32, 2>}, {pipeline_mode = #tpu.pipeline_mode<synchronous>, transform_indices = @transform_8, window_bounds = array<i64: 1, 2>}, {transform_indices = @transform_9, window_bounds = array<i64: 2, 2>}]} {
    %c0 = arith.constant 0 : index
    %c0_0 = arith.constant 0 : index
    %0 = vector.load %arg1[%c0, %c0_0] : memref<2x392xf32, #tpu.memory_space<vmem>>, vector<2x392xf32>
    %c0_1 = arith.constant 0 : index
    %c0_2 = arith.constant 0 : index
    %1 = vector.load %arg2[%c0_1, %c0_2] : memref<392x64xf32, #tpu.memory_space<vmem>>, vector<392x64xf32>
    %cst = arith.constant dense<0.000000e+00> : vector<2x64xf32>
    %2 = tpu.matmul %0, %1, %cst {dimension_numbers = #tpu.dot_dimension_numbers<[1], [0], [0], [1], [0, 0, 1, 1], [], []>} : vector<2x392xf32>, vector<392x64xf32>, vector<2x64xf32> -> vector<2x64xf32>
    %c0_3 = arith.constant 0 : index
    %c0_4 = arith.constant 0 : index
    %3 = vector.load %arg3[%c0_3, %c0_4] : memref<1x64xf32, #tpu.memory_space<vmem>>, vector<1x64xf32>
    %4 = vector.broadcast %3 : vector<1x64xf32> to vector<2x64xf32>
    %5 = arith.addf %2, %4 : vector<2x64xf32>
    %cst_5 = arith.constant 0.000000e+00 : f32
    %6 = vector.broadcast %cst_5 : f32 to vector<2x64xf32>
    %7 = arith.maximumf %5, %6 : vector<2x64xf32>
    %c0_6 = arith.constant 0 : index
    %c0_7 = arith.constant 0 : index
    %8 = vector.load %arg4[%c0_6, %c0_7] : memref<64x20xf32, #tpu.memory_space<vmem>>, vector<64x20xf32>
    %cst_8 = arith.constant dense<0.000000e+00> : vector<2x20xf32>
    %9 = tpu.matmul %7, %8, %cst_8 {dimension_numbers = #tpu.dot_dimension_numbers<[1], [0], [0], [1], [0, 0, 1, 1], [], []>} : vector<2x64xf32>, vector<64x20xf32>, vector<2x20xf32> -> vector<2x20xf32>
    %c0_9 = arith.constant 0 : index
    %c0_10 = arith.constant 0 : index
    %10 = vector.load %arg5[%c0_9, %c0_10] : memref<1x20xf32, #tpu.memory_space<vmem>>, vector<1x20xf32>
    %11 = vector.broadcast %10 : vector<1x20xf32> to vector<2x20xf32>
    %12 = arith.addf %9, %11 : vector<2x20xf32>
    %13 = tpu.iota {dimensions = array<i32: 1>} : vector<2x20xi32>
    %c10_i32 = arith.constant 10 : i32
    %14 = vector.broadcast %c10_i32 : i32 to vector<2x20xi32>
    %15 = arith.cmpi slt, %13, %14 : vector<2x20xi32>
    %cst_11 = arith.constant 0xFF800000 : f32
    %16 = vector.broadcast %cst_11 : f32 to vector<2x20xf32>
    %17 = arith.select %15, %12, %16 : vector<2x20xi1>, vector<2x20xf32>
    %cst_12 = arith.constant dense<0xFF800000> : vector<2xf32>
    %18 = vector.multi_reduction <maximumf>, %17, %cst_12 [1] : vector<2x20xf32> to vector<2xf32>
    %19 = vector.shape_cast %18 : vector<2xf32> to vector<2x1xf32>
    %cst_13 = arith.constant 0xFF800000 : f32
    %20 = vector.broadcast %cst_13 : f32 to vector<2x20xf32>
    %21 = arith.select %15, %20, %12 : vector<2x20xi1>, vector<2x20xf32>
    %cst_14 = arith.constant dense<0xFF800000> : vector<2xf32>
    %22 = vector.multi_reduction <maximumf>, %21, %cst_14 [1] : vector<2x20xf32> to vector<2xf32>
    %23 = vector.shape_cast %22 : vector<2xf32> to vector<2x1xf32>
    %24 = vector.shape_cast %19 : vector<2x1xf32> to vector<2x1xf32>
    %25 = vector.broadcast %24 : vector<2x1xf32> to vector<2x20xf32>
    %26 = vector.shape_cast %23 : vector<2x1xf32> to vector<2x1xf32>
    %27 = vector.broadcast %26 : vector<2x1xf32> to vector<2x20xf32>
    %28 = arith.select %15, %25, %27 : vector<2x20xi1>, vector<2x20xf32>
    %29 = arith.cmpf oeq, %12, %28 : vector<2x20xf32>
    %30 = arith.extui %29 : vector<2x20xi1> to vector<2x20xi32>
    %31 = arith.sitofp %30 : vector<2x20xi32> to vector<2x20xf32>
    %c0_15 = arith.constant 0 : index
    %c0_16 = arith.constant 0 : index
    %32 = vector.load %arg6[%c0_15, %c0_16] : memref<20x32xf32, #tpu.memory_space<vmem>>, vector<20x32xf32>
    %cst_17 = arith.constant dense<0.000000e+00> : vector<2x32xf32>
    %33 = tpu.matmul %31, %32, %cst_17 {dimension_numbers = #tpu.dot_dimension_numbers<[1], [0], [0], [1], [0, 0, 1, 1], [], []>} : vector<2x20xf32>, vector<20x32xf32>, vector<2x32xf32> -> vector<2x32xf32>
    %c0_18 = arith.constant 0 : index
    %c0_19 = arith.constant 0 : index
    %34 = vector.load %arg7[%c0_18, %c0_19] : memref<1x32xf32, #tpu.memory_space<vmem>>, vector<1x32xf32>
    %35 = vector.broadcast %34 : vector<1x32xf32> to vector<2x32xf32>
    %36 = arith.addf %33, %35 : vector<2x32xf32>
    %cst_20 = arith.constant 0.000000e+00 : f32
    %37 = vector.broadcast %cst_20 : f32 to vector<2x32xf32>
    %38 = arith.maximumf %36, %37 : vector<2x32xf32>
    %c0_21 = arith.constant 0 : index
    %c0_22 = arith.constant 0 : index
    %39 = vector.load %arg8[%c0_21, %c0_22] : memref<32x2xf32, #tpu.memory_space<vmem>>, vector<32x2xf32>
    %cst_23 = arith.constant dense<0.000000e+00> : vector<2x2xf32>
    %40 = tpu.matmul %38, %39, %cst_23 {dimension_numbers = #tpu.dot_dimension_numbers<[1], [0], [0], [1], [0, 0, 1, 1], [], []>} : vector<2x32xf32>, vector<32x2xf32>, vector<2x2xf32> -> vector<2x2xf32>
    %c0_24 = arith.constant 0 : index
    %c0_25 = arith.constant 0 : index
    %41 = vector.load %arg9[%c0_24, %c0_25] : memref<1x2xf32, #tpu.memory_space<vmem>>, vector<1x2xf32>
    %42 = vector.broadcast %41 : vector<1x2xf32> to vector<2x2xf32>
    %43 = arith.addf %40, %42 : vector<2x2xf32>
    %c0_26 = arith.constant 0 : index
    %c0_27 = arith.constant 0 : index
    %44 = vector.load %arg10[%c0_26, %c0_27] : memref<2x2xf32, #tpu.memory_space<vmem>>, vector<2x2xf32>
    tpu.vector_store %arg10[%c0_26, %c0_27], %43 {strides = array<i32>} : memref<2x2xf32, #tpu.memory_space<vmem>>, vector<2x2xf32>,
    return
  }
  func.func @transform_0(%arg0: i32) -> (i32, i32) {
    %c0_i32 = arith.constant 0 : i32
    %c0_i32_0 = arith.constant 0 : i32
    return %arg0, %c0_i32 : i32, i32
  }
  func.func @transform_1(%arg0: i32) -> (i32, i32) {
    %c0_i32 = arith.constant 0 : i32
    %c0_i32_0 = arith.constant 0 : i32
    %c0_i32_1 = arith.constant 0 : i32
    return %c0_i32, %c0_i32_0 : i32, i32
  }
  func.func @transform_2(%arg0: i32) -> (i32, i32) {
    %c0_i32 = arith.constant 0 : i32
    %c0_i32_0 = arith.constant 0 : i32
    %c0_i32_1 = arith.constant 0 : i32
    return %c0_i32, %c0_i32_0 : i32, i32
  }
  func.func @transform_3(%arg0: i32) -> (i32, i32) {
    %c0_i32 = arith.constant 0 : i32
    %c0_i32_0 = arith.constant 0 : i32
    %c0_i32_1 = arith.constant 0 : i32
    return %c0_i32, %c0_i32_0 : i32, i32
  }
  func.func @transform_4(%arg0: i32) -> (i32, i32) {
    %c0_i32 = arith.constant 0 : i32
    %c0_i32_0 = arith.constant 0 : i32
    %c0_i32_1 = arith.constant 0 : i32
    return %c0_i32, %c0_i32_0 : i32, i32
  }
  func.func @transform_5(%arg0: i32) -> (i32, i32) {
    %c0_i32 = arith.constant 0 : i32
    %c0_i32_0 = arith.constant 0 : i32
    %c0_i32_1 = arith.constant 0 : i32
    return %c0_i32, %c0_i32_0 : i32, i32
  }
  func.func @transform_6(%arg0: i32) -> (i32, i32) {
    %c0_i32 = arith.constant 0 : i32
    %c0_i32_0 = arith.constant 0 : i32
    %c0_i32_1 = arith.constant 0 : i32
    return %c0_i32, %c0_i32_0 : i32, i32
  }
  func.func @transform_7(%arg0: i32) -> (i32, i32) {
    %c0_i32 = arith.constant 0 : i32
    %c0_i32_0 = arith.constant 0 : i32
    %c0_i32_1 = arith.constant 0 : i32
    return %c0_i32, %c0_i32_0 : i32, i32
  }
  func.func @transform_8(%arg0: i32) -> (i32, i32) {
    %c0_i32 = arith.constant 0 : i32
    %c0_i32_0 = arith.constant 0 : i32
    %c0_i32_1 = arith.constant 0 : i32
    return %c0_i32, %c0_i32_0 : i32, i32
  }
  func.func @transform_9(%arg0: i32) -> (i32, i32) {
    %c0_i32 = arith.constant 0 : i32
    %c0_i32_0 = arith.constant 0 : i32
    return %arg0, %c0_i32 : i32, i32
  }
}

</mosaic_0001>

<bundles_post_ra>
// kernel: tpu_custom_call.1
= control target key start
LH: loop header
LB: loop body
LE: loop exit
PB: predicated region body
PF: predicated region fallthrough
CT: control target
= control target key end

     0   :  { %v759_v5 = vmov 0.0|0.0   ;;  %v760_v22 = vmov 1983009808   ;;  %v95_v24 = vlaneseq  ;;  %s1063_s0 = inlined_call_operand.vmem [shape: f32[2,392], index: 0, kind: input, shape index: {}]   ;;  %s1064_s1 = inlined_call_operand.vmem [shape: f32[392,64], index: 1, kind: input, shape index: {}]   ;;  %s1065_s2 = inlined_call_operand.vmem [shape: f32[1,64], index: 2, kind: input, shape index: {}]   ;;  %s1066_s3 = inlined_call_operand.vmem [shape: f32[64,20], index: 3, kind: input, shape index: {}]   ;;  %s1067_s4 = inlined_call_operand.vmem [shape: f32[1,20], index: 4, kind: input, shape index: {}]   ;;  %s1068_s5 = inlined_call_operand.vmem [shape: f32[20,32], index: 5, kind: input, shape index: {}]   ;;  %s1069_s6 = inlined_call_operand.vmem [shape: f32[1,32], index: 6, kind: input, shape index: {}]   ;;  %s1070_s7 = inlined_call_operand.vmem [shape: f32[32,2], index: 7, kind: input, shape index: {}]   ;;  %s1071_s8 = inlined_call_operand.vmem [shape: f32[1,2], index: 8, kind: input, shape index: {}]   ;;  %s1072_s9 = inlined_call_operand.hbm [shape: f32[2,2], index: 9, kind: output, shape index: {}]  }
   0x1   :  { %v50_v0 = vld [vmem:[%s1064_s1 + $0x80] sm:$0xff]  ;;  %v51_v1 = vld [vmem:[%s1064_s1 + $0x88] sm:$0xff]  ;;  %684 = vmatprep.subr.bf16.mxu1 %v759_v5  ;;  %v52_v10 = vld [vmem:[%s1064_s1 + $0x90] sm:$0xff]  ;;  %v93_v23 = vunpack.c.l.s4 %v760_v22 }
   0x2   :  { %v34_v2 = vld [vmem:[%s1064_s1] sm:$0xff]  ;;  %v652_v3 = vpack.c.bf16 %v51_v1, %v50_v0  ;;  %v35_v4 = vld [vmem:[%s1064_s1 + $0x8] sm:$0xff]  ;;  %v53_v11 = vld [vmem:[%s1064_s1 + $0x98] sm:$0xff]  ;;  %v96_v35 = vshrl.u32 %v95_v24, 7 }
   0x3   :  { %v66_v6 = vld [vmem:[%s1064_s1 + $0x100] sm:$0xff]  ;;  %v67_v7 = vld [vmem:[%s1064_s1 + $0x108] sm:$0xff]  ;;  %v654_v8 = vpack.c.bf16 %v35_v4, %v34_v2  ;;  %v36_v12 = vld [vmem:[%s1064_s1 + $0x10] sm:$0xff]  ;;  %v656_v13 = vpack.c.bf16 %v53_v11, %v52_v10  ;;  %v94_v34 = vunpack.c.0.s8 %v93_v23 }
   0x4   :  { %v685_v9 = vpack.c.bf16 %v67_v7, %v66_v6  ;;  %653 = vmatprep.subr.bf16.mxu0 %v652_v3  ;;  %v37_v14 = vld [vmem:[%s1064_s1 + $0x18] sm:$0xff]  ;;  %v68_v15 = vld [vmem:[%s1064_s1 + $0x110] sm:$0xff]  ;;  %v54_v19 = vld [vmem:[%s1064_s1 + $0xa0] sm:$0xff] }
   0x5   :  { %v69_v16 = vld [vmem:[%s1064_s1 + $0x118] sm:$0xff]  ;;  %655 = vmatpush3.bf16.msra.mxu0 %v654_v8  ;;  %v658_v17 = vpack.c.bf16 %v37_v14, %v36_v12  ;;  %v55_v20 = vld [vmem:[%s1064_s1 + $0xa8] sm:$0xff]  ;;  %v38_v21 = vld [vmem:[%s1064_s1 + $0x20] sm:$0xff]  ;;  %v97_v46 = vsub.s32 %v94_v34, %v96_v35 }
   0x6   :  { %686 = vmatpush1.bf16.msra.mxu1 %v685_v9  ;;  %v688_v18 = vpack.c.bf16 %v69_v16, %v68_v15  ;;  %657 = vmatprep.subr.bf16.mxu0 %v656_v13  ;;  %v660_v25 = vpack.c.bf16 %v55_v20, %v54_v19  ;;  %v39_v26 = vld [vmem:[%s1064_s1 + $0x28] sm:$0xff]  ;;  %v70_v27 = vld [vmem:[%s1064_s1 + $0x120] sm:$0xff]  ;;  %v56_v29 = vld [vmem:[%s1064_s1 + $0xb0] sm:$0xff] }
   0x7   :  { %687 = vmatprep.subr.bf16.mxu1 %v759_v5  ;;  %v71_v28 = vld [vmem:[%s1064_s1 + $0x128] sm:$0xff]  ;;  %v57_v30 = vld [vmem:[%s1064_s1 + $0xb8] sm:$0xff]  ;;  %v662_v31 = vpack.c.bf16 %v39_v26, %v38_v21  ;;  %v40_v33 = vld [vmem:[%s1064_s1 + $0x30] sm:$0xff] }
   0x8   :  { %v691_v32 = vpack.c.bf16 %v71_v28, %v70_v27  ;;  %v664_v36 = vpack.c.bf16 %v57_v30, %v56_v29  ;;  %v41_v37 = vld [vmem:[%s1064_s1 + $0x38] sm:$0xff]  ;;  %v72_v38 = vld [vmem:[%s1064_s1 + $0x130] sm:$0xff]  ;;  %v58_v40 = vld [vmem:[%s1064_s1 + $0xc0] sm:$0xff] }
   0x9   :  { %659 = vmatpush3.bf16.msra.mxu0 %v658_v17  ;;  %v73_v39 = vld [vmem:[%s1064_s1 + $0x138] sm:$0xff]  ;;  %v59_v41 = vld [vmem:[%s1064_s1 + $0xc8] sm:$0xff]  ;;  %v666_v42 = vpack.c.bf16 %v41_v37, %v40_v33  ;;  %v42_v44 = vld [vmem:[%s1064_s1 + $0x40] sm:$0xff] }
   0xa   :  { %689 = vmatpush1.bf16.msra.mxu1 %v688_v18  ;;  %661 = vmatprep.subr.bf16.mxu0 %v660_v25  ;;  %v694_v43 = vpack.c.bf16 %v73_v39, %v72_v38  ;;  %v43_v45 = vld [vmem:[%s1064_s1 + $0x48] sm:$0xff]  ;;  %v668_v47 = vpack.c.bf16 %v59_v41, %v58_v40  ;;  %v74_v48 = vld [vmem:[%s1064_s1 + $0x140] sm:$0xff]  ;;  %v60_v50 = vld [vmem:[%s1064_s1 + $0xd0] sm:$0xff] }
   0xb   :  { %690 = vmatprep.subr.bf16.mxu1 %v759_v5  ;;  %v75_v49 = vld [vmem:[%s1064_s1 + $0x148] sm:$0xff]  ;;  %v61_v51 = vld [vmem:[%s1064_s1 + $0xd8] sm:$0xff]  ;;  %v670_v52 = vpack.c.bf16 %v43_v45, %v42_v44  ;;  %v33_v53 = vld [vmem:[%s1063_s0] sm:$0xff] }
   0xc   :  { %v697_v54 = vpack.c.bf16 %v75_v49, %v74_v48  ;;  %v44_v55 = vld [vmem:[%s1064_s1 + $0x50] sm:$0xff]  ;;  %v91_v56 = vcombine.high %v33_v53, %v33_v53  ;;  %v98_v57 = vrot.slane %v33_v53, %v97_v46  ;;  %v672_v58 = vpack.c.bf16 %v61_v51, %v60_v50  ;;  %v45_v59 = vld [vmem:[%s1064_s1 + $0x58] sm:$0xff]  ;;  %v62_v62 = vld [vmem:[%s1064_s1 + $0xe0] sm:$0xff] }
   0xd   :  { %663 = vmatpush3.bf16.msra.mxu0 %v662_v31  ;;  %v76_v60 = vld [vmem:[%s1064_s1 + $0x150] sm:$0xff]  ;;  %v77_v61 = vld [vmem:[%s1064_s1 + $0x158] sm:$0xff]  ;;  %v63_v63 = vld [vmem:[%s1064_s1 + $0xe8] sm:$0xff] }
   0xe   :  { %692 = vmatpush1.bf16.msra.mxu1 %v691_v32  ;;  %665 = vmatprep.subr.bf16.mxu0 %v664_v36  ;;  %v106_v0 = vcombine.high %v98_v57, %v98_v57  ;;  %v105_v1 = vrot.slane %v91_v56, %v97_v46 }
   0xf   :  { %693 = vmatprep.subr.bf16.mxu1 %v759_v5 }
  0x11   :  { %667 = vmatpush3.bf16.msra.mxu0 %v666_v42 }
  0x12   :  { %695 = vmatpush1.bf16.msra.mxu1 %v694_v43  ;;  %669 = vmatprep.subr.bf16.mxu0 %v668_v47 }
  0x13   :  { %696 = vmatprep.subr.bf16.mxu1 %v759_v5 }
  0x14   :  { %14 = vsyncpa [#allocation3], 0  ;;  %vm111_vm0 = vcmask 64512   ;;  %v674_v2 = vpack.c.bf16 %v45_v59, %v44_v55  ;;  %v700_v3 = vpack.c.bf16 %v77_v61, %v76_v60  ;;  %v46_v4 = vld [vmem:[%s1064_s1 + $0x60] sm:$0xff]  ;;  %v107_v6 = vcombine.high %v105_v1, %v105_v1  ;;  %v47_v8 = vld [vmem:[%s1064_s1 + $0x68] sm:$0xff]  ;;  %178 = vmatprep.mubr.f32.mxu0 %v106_v0  ;;  %s763_s12 = smov [#allocation2]  }
  0x15   :  { %671 = vmatpush3.bf16.msra.mxu0 %v670_v52  ;;  %v676_v7 = vpack.c.bf16 %v63_v63, %v62_v62  ;;  %v78_v9 = vld [vmem:[%s1064_s1 + $0x160] sm:$0xff]  ;;  %v79_v10 = vld [vmem:[%s1064_s1 + $0x168] sm:$0xff]  ;;  %v64_v11 = vld [vmem:[%s1064_s1 + $0xf0] sm:$0xff]  ;;  %v678_v13 = vpack.c.bf16 %v47_v8, %v46_v4  ;;  %v761_v26 = vmov 0.0   ;;  %vm762_vm1 = vmmov 0   ;;  %s542_s13 = sshll.u32 %s763_s12, 4  ;;  %s543_s13 = int_to_ptr.vmem [resolvable:$true] %s542_s13 }
  0x16   :  { %698 = vmatpush1.bf16.msra.mxu1 %v697_v54  ;;  %673 = vmatprep.subr.bf16.mxu0 %v672_v58  ;;  %v65_v12 = vld [vmem:[%s1064_s1 + $0xf8] sm:$0xff]  ;;  %v703_v14 = vpack.c.bf16 %v79_v10, %v78_v9  ;;  %v48_v15 = vld [vmem:[%s1064_s1 + $0x70] sm:$0xff]  ;;  %v255_v22 = vld [vmem:[%s1066_s3] sm:$0xff]  ;;  %vm270_vm2 = vcmask 523264   ;;  %v345_v46 = vand.u32 127, %v95_v24  ;;  %vm348_vm4 = vcmask 156672   ;;  %p740_p1 = scmp.lt.s32.totalorder %s543_s13, %s543_s13 }
  0x17   :  { %699 = vmatprep.subr.bf16.mxu1 %v759_v5  ;;  %551 = vmatprep.mubr.msk.f32.mxu1 %vm111_vm0, %v107_v6  ;;  %v680_v16 = vpack.c.bf16 %v65_v12, %v64_v11  ;;  %v49_v17 = vld [vmem:[%s1064_s1 + $0x78] sm:$0xff]  ;;  %v80_v18 = vld [vmem:[%s1064_s1 + $0x170] sm:$0xff]  ;;  %v256_v23 = vld [vmem:[%s1066_s3 + $0x8] sm:$0xff]  ;;  %vm374_vm5 = vcmask 1043456   ;;  %vm370_vm6 = vcmask 162816   ;;  %vm460_vm8 = vcmask 261120  }
  0x18   :  { %v81_v19 = vld [vmem:[%s1064_s1 + $0x178] sm:$0xff]  ;;  %v682_v20 = vpack.c.bf16 %v49_v17, %v48_v15  ;;  %v709_v25 = vpack.c.bf16 %v256_v23, %v255_v22  ;;  %v82_v27 = vld [vmem:[%s1064_s1 + $0x180] sm:$0xff]  ;;  %v257_v28 = vld [vmem:[%s1066_s3 + $0x10] sm:$0xff]  ;;  %vm346_vm3 = vcmp.lt.s32.totalorder %v345_v46, 10  ;;  %vm534_vm9 = vcmask 9216  }
  0x19   :  { %675 = vmatpush3.bf16.msra.mxu0 %v674_v2  ;;  %v706_v21 = vpack.c.bf16 %v81_v19, %v80_v18  ;;  %v258_v29 = vld [vmem:[%s1066_s3 + $0x18] sm:$0xff]  ;;  %v259_v31 = vld [vmem:[%s1066_s3 + $0x20] sm:$0xff]  ;;  %v260_v32 = vld [vmem:[%s1066_s3 + $0x28] sm:$0xff] }
  0x1a   :  { %701 = vmatpush1.bf16.msra.mxu1 %v700_v3  ;;  %677 = vmatprep.subr.bf16.mxu0 %v676_v7  ;;  %v712_v30 = vpack.c.bf16 %v258_v29, %v257_v28  ;;  %v715_v33 = vpack.c.bf16 %v260_v32, %v259_v31  ;;  %v261_v34 = vld [vmem:[%s1066_s3 + $0x30] sm:$0xff]  ;;  %v262_v35 = vld [vmem:[%s1066_s3 + $0x38] sm:$0xff]  ;;  %v550_v39 = vld [vmem:[%s1065_s2] ss:$0 sm:$0xff] }
  0x1b   :  { %702 = vmatprep.subr.bf16.mxu1 %v759_v5  ;;  %v718_v36 = vpack.c.bf16 %v262_v35, %v261_v34  ;;  %v552_v47 = vld [vmem:[%s1067_s4] ss:$0 sm:$0xff]  ;;  %v361_v55 = vld [vmem:[%s1068_s5 + $0x8] sm:$0xff]  ;;  %v452_v2 = vld [vmem:[%s1070_s7 + $0x18] sm:$0xff] }
  0x1c   :  { %v360_v24 = vld [vmem:[%s1068_s5] sm:$0xff]  ;;  %v450_v60 = vld [vmem:[%s1070_s7 + $0x8] sm:$0xff] }
  0x1d   :  { %679 = vmatpush3.bf16.msra.mxu0 %v678_v13  ;;  %v721_v56 = vpack.c.bf16 %v361_v55, %v360_v24  ;;  %v449_v59 = vld [vmem:[%s1070_s7] sm:$0xff] }
  0x1e   :  { %704 = vmatpush1.bf16.msra.mxu1 %v703_v14  ;;  %681 = vmatprep.subr.bf16.mxu0 %v680_v16  ;;  %v724_v63 = vpack.c.bf16 %v450_v60, %v449_v59  ;;  %v555_v4 = vld [vmem:[%s1069_s6] ss:$0 sm:$0xff] }
  0x1f   :  { %705 = vmatprep.subr.bf16.mxu1 %v759_v5 }
  0x21   :  { %683 = vmatpush3.bf16.msra.mxu0 %v682_v20 }
  0x22   :  { %707 = vmatpush1.bf16.msra.mxu1 %v706_v21  ;;  %708 = vmatprep.subr.bf16.mxu0 %v759_v5 }
  0x23   :  { %216 = vmatprep.subr.mxu1 %v761_v26 }
  0x24   :  { %179 = vmatmul.mubr.f32.vlgmr.msra.gmra.mrb[0].mxu0 %v98_v57  ;;  %v362_v57 = vld [vmem:[%s1068_s5 + $0x10] sm:$0xf] }
  0x25   :  { %710 = vmatpush3.bf16.msra.mxu0 %v709_v25  ;;  %629 = vmatprep.mubr.msk.f32.mxu0 %vm762_vm1, %v761_v26 }
  0x26   :  { %217 = vmatpush1.msra.mxu1 %v82_v27  ;;  %711 = vmatprep.subr.bf16.mxu0 %v759_v5 }
  0x27   :  { %249 = vmatmul.mubr.f32.vlgmr.msra.gmra.mrb[0].mxu1 %v105_v1  ;;  %720 = vmatprep.subr.bf16.mxu1 %v759_v5  ;;  %v451_v1 = vld [vmem:[%s1070_s7 + $0x10] sm:$0xff]  ;;  %s735_s7 = scalar_lea.vmem %s543_s13, 32 }
  0x28   :  { %638 = vmatprep.mubr.msk.f32.mxu1 %vm762_vm1, %v761_v26  ;;  %722 = vmatpush3.bf16.msra.mxu1 %v721_v56  ;;  %v727_v3 = vpack.c.bf16 %v452_v2, %v451_v1  ;;  %p736_p0 = scmp.ne.s32.totalorder %s543_s13, %s735_s7  ;;  %p741_p2 = scmp.lt.s32.totalorder %s735_s7, %s735_s7 }
  0x29   :  { %713 = vmatpush3.bf16.msra.mxu0 %v712_v30  ;;  %636 = vmatprep.subr.mxu1 %v761_v26 }
  0x2a   :  { %714 = vmatprep.subr.bf16.mxu0 %v759_v5  ;;  %p742_p3 = por %p741_p2, %p740_p1 }
  0x2c   :  { %637 = vmatpush3.msk.msra.mxu1 %vm374_vm5, %v362_v57  ;;  %p743_p4 = pnand %p742_p3, %p736_p0 }
  0x2d   :  { %716 = vmatpush3.bf16.msra.mxu0 %v715_v33  ;;  %723 = vmatprep.subr.bf16.mxu1 %v759_v5 }
  0x2e   :  { %717 = vmatprep.subr.bf16.mxu0 %v759_v5 }
  0x31   :  { %719 = vmatpush3.bf16.msra.mxu0 %v718_v36 }
  0xf7   :  { %v592_v37 = vpop.f32.mrb[0].mxu0 }
  0xf8   :  { %v593_v38 = vpop.f32.mrb[1].mxu0 }
  0xf9   :  { %v594_v40 = vadd.f32 %v593_v38, %v592_v37 }
  0xfa   :  { %v250_v41 = vpop.f32.mrb[0].mxu1 }
  0xfb   :  { %v252_v42 = vpop.f32.mrb[1].mxu1  ;;  %v181_v43 = vadd.f32 %v594_v40, %v550_v39 }
  0xfd   :  { %v251_v44 = vadd.f32 %v250_v41, %v181_v43 }
  0xff   :  { %v254_v45 = vmax.f32 %v251_v44, 0.0 }
 0x101   :  { %630 = vmatmul.mubr.msk.f32.vlgmr.msra.gmra.mrb[2].mxu0 %vm270_vm2, %v254_v45 }
 0x1d4   :  { %v340_v48 = vpop.f32.mrb[2].mxu0 }
 0x1d5   :  { %v341_v49 = vadd.f32 %v552_v47, %v340_v48  ;;  %v631_v50 = vpop.f32.mrb[3].mxu0 }
 0x1d7   :  { %v347_v51 = vsel %vm346_vm3, %v341_v49, -inf  ;;  %v352_v53 = vsel %vm346_vm3, -inf, %v341_v49 }
 0x1d8   :  { %v349_v52 = vsel %vm348_vm4, %v347_v51, -inf  ;;  %v353_v54 = vsel %vm348_vm4, %v352_v53, -inf }
 0x1d9   :  { %350 = vmax.xlane.f32.xlu0 %v349_v52 }
 0x1dd   :  { %354 = vmax.xlane.f32.xlu0 %v353_v54 }
 0x266   :  { %v351_v58 = vpop.xlane.xlu0 %350 }
 0x26a   :  { %v355_v61 = vpop.xlane.xlu0 %354 }
 0x26b   :  { %v356_v62 = vsel %vm346_vm3, %v351_v58, %v355_v61 }
 0x26c   :  { %vm357_vm7 = vcmp.eq.f32.partialorder %v341_v49, %v356_v62 }
 0x26d   :  { %v554_v0 = vsel %vm357_vm7, 1.0, %v761_v26 }
 0x26e   :  { %639 = vmatmul.mubr.msk.f32.vlgmr.msra.gmra.mrb[2].mxu1 %vm370_vm6, %v554_v0 }
 0x26f   :  { %725 = vmatpush3.bf16.msra.mxu1 %v724_v63  ;;  %649 = vmatprep.mubr.msk.f32.mxu1 %vm762_vm1, %v761_v26 }
 0x270   :  { %726 = vmatprep.subr.bf16.mxu1 %v759_v5  ;;  %v558_v5 = vld [vmem:[%s1071_s8] ss:$0 sm:$0xff] }
 0x273   :  { %728 = vmatpush3.bf16.msra.mxu1 %v727_v3 }
 0x341   :  { %v444_v6 = vpop.f32.mrb[2].mxu1 }
 0x342   :  { %v445_v7 = vadd.f32 %v555_v4, %v444_v6  ;;  %v640_v8 = vpop.f32.mrb[3].mxu1 }
 0x344   :  { %v448_v9 = vmax.f32 %v445_v7, 0.0 }
 0x346   :  { %650 = vmatmul.mubr.msk.f32.vlgmr.msra.gmra.mrb[4].mxu1 %vm460_vm8, %v448_v9 }
 0x419   :  { %v530_v10 = vpop.f32.mrb[4].mxu1 }
 0x41a   :  { %v531_v11 = vadd.f32 %v558_v5, %v530_v10  ;;  %v651_v12 = vpop.f32.mrb[5].mxu1 }
 0x41c   :  { %535 = vst.msk [vmem:[#allocation2] sm:$0x3] %vm534_vm9, %v531_v11 }
 0x41d   :  { %746 = shalt.err (!%p743_p4)
}
 0x41e   :  { %s747_s15 = scalar_lea.hbm %s1072_s9, 32 }
 0x41f   :  { %p748_p5 = scmp.ne.s32.totalorder %s1072_s9, %s747_s15  ;;  %p751_p6 = scmp.lt.u32.totalorder %s747_s15, %s1072_s9 }
 0x421   :  { %p753_p7 = pnand %p751_p6, %p748_p5 }
 0x423   :  { %756 = shalt.err (!%p753_p7)
}
 0x424   :  { %545 = dma.vmem_to_hbm [thread:$0]  %s543_s13, 32, %s1072_s9, [#allocation3]  }
 0x425   :  { %757 = dma.done.wait [#allocation3], 32  }
 0x426   :  { %758 = vsyncadd [#allocation3], 4294967264 }
 0x427   :  { %549 = vsyncpa [#allocation3], 1 }

</bundles_post_ra>
